<compile_context>
chip_gen: v6e
topology: v6e:2x2x1
jax: 0.10.0
libtpu: 0.0.40
codegen_flags: <defaults>
</compile_context>

<pallas_src>
import jax
import jax.numpy as jnp
import numpy as np
from jax.experimental import pallas as pl
from jax.experimental.pallas import tpu as pltpu


# ----------------------------- helpers -------------------------------------
def _round_up(x, m):
    return ((x + m - 1) // m) * m


def _pad2(a, rows, cols):
    out = jnp.zeros((rows, cols), a.dtype)
    return out.at[: a.shape[0], : a.shape[1]].set(a)


def fold_bn(w, b, gamma, beta, running_mean=None, running_var=None, eps=1e-5):
    """Fold an eval-mode BatchNorm1d that follows a Linear into that Linear."""
    d = w.shape[1]
    if running_mean is None:
        running_mean = jnp.zeros((d,), jnp.float32)
    if running_var is None:
        running_var = jnp.ones((d,), jnp.float32)
    scale = gamma / jnp.sqrt(running_var + eps)
    w_f = w * scale[None, :]
    b_f = (b - running_mean[None, :]) * scale[None, :] + beta[None, :]
    return w_f, b_f


_F32 = jnp.float32
_BF16 = jnp.bfloat16


# ----------------------------- fused kernel (small graphs) ------------------
def gin_fused_kernel(a_ref, xw1_ref, b1_ref, w2_ref, b2_ref,
                     w3_ref, b3_ref, w4_ref, b4_ref,
                     wl1_ref, bl1_ref, wl2_ref, bl2_ref, o_ref):
    a = a_ref[...]
    # ---- conv1: A @ (X W1) + b1 -> relu -> @W2 + b2 -> relu ----
    h = jnp.dot(a, xw1_ref[...], preferred_element_type=_F32) + b1_ref[...]
    h = jnp.maximum(h, 0.0)
    h = jnp.dot(h.astype(_BF16), w2_ref[...],
                preferred_element_type=_F32) + b2_ref[...]
    h = jnp.maximum(h, 0.0)                      # h1 stays in VMEM (no HBM trip)
    # ---- conv2 (reassociated): A @ (h1 W3) + b3 -> relu -> @W4 + b4 -> relu --
    g = jnp.dot(h.astype(_BF16), w3_ref[...], preferred_element_type=_F32)
    h = jnp.dot(a, g.astype(_BF16), preferred_element_type=_F32) + b3_ref[...]
    h = jnp.maximum(h, 0.0)
    h = jnp.dot(h.astype(_BF16), w4_ref[...],
                preferred_element_type=_F32) + b4_ref[...]
    h = jnp.maximum(h, 0.0)
    # ---- lin1 + relu ----
    h = jnp.dot(h.astype(_BF16), wl1_ref[...],
                preferred_element_type=_F32) + bl1_ref[...]
    h = jnp.maximum(h, 0.0)
    # ---- dropout(p=0.5): identity in eval mode ----
    # ---- lin2 ----
    o_ref[...] = jnp.dot(h.astype(_BF16), wl2_ref[...],
                         preferred_element_type=_F32) + bl2_ref[...]


# ------------------------ K-tiled kernels (large graphs) --------------------
def conv1_ktiled_kernel(a_ref, xw1_ref, b1_ref, w2_ref, b2_ref, w3_ref,
                        g_ref, acc_ref):
    k = pl.program_id(1)

    @pl.when(k == 0)
    def _():
        acc_ref[...] = jnp.zeros_like(acc_ref)

    acc_ref[...] += jnp.dot(a_ref[...], xw1_ref[...],
                            preferred_element_type=_F32)

    @pl.when(k == pl.num_programs(1) - 1)
    def _():
        h = jnp.maximum(acc_ref[...] + b1_ref[...], 0.0)
        h = jnp.maximum(jnp.dot(h.astype(_BF16), w2_ref[...],
                                preferred_element_type=_F32) + b2_ref[...], 0.0)
        # store g1 = h1 @ W3 so pass 2 aggregates A @ g1 directly
        g_ref[...] = jnp.dot(h.astype(_BF16), w3_ref[...],
                             preferred_element_type=_F32).astype(g_ref.dtype)


def conv2_head_ktiled_kernel(a_ref, g_ref, b3_ref, w4_ref, b4_ref,
                             wl1_ref, bl1_ref, wl2_ref, bl2_ref,
                             o_ref, acc_ref):
    k = pl.program_id(1)

    @pl.when(k == 0)
    def _():
        acc_ref[...] = jnp.zeros_like(acc_ref)

    acc_ref[...] += jnp.dot(a_ref[...], g_ref[...],
                            preferred_element_type=_F32)

    @pl.when(k == pl.num_programs(1) - 1)
    def _():
        h = jnp.maximum(acc_ref[...] + b3_ref[...], 0.0)
        h = jnp.maximum(jnp.dot(h.astype(_BF16), w4_ref[...],
                                preferred_element_type=_F32) + b4_ref[...], 0.0)
        h = jnp.maximum(jnp.dot(h.astype(_BF16), wl1_ref[...],
                                preferred_element_type=_F32) + bl1_ref[...], 0.0)
        # dropout(p=0.5) is identity in eval mode
        o_ref[...] = jnp.dot(h.astype(_BF16), wl2_ref[...],
                             preferred_element_type=_F32) + bl2_ref[...]


# --------------------------- parameter setup --------------------------------
def init_params(key, in_channels, dim, out_channels):
    """Deterministic synthetic parameters (PyTorch shapes, stored as (in, out))."""
    ks = jax.random.split(key, 6)

    def lin(k, fan_in, fan_out):
        bound = 1.0 / np.sqrt(fan_in)
        kw, kb = jax.random.split(k)
        w = jax.random.uniform(kw, (fan_in, fan_out), _F32, -bound, bound)
        b = jax.random.uniform(kb, (1, fan_out), _F32, -bound, bound)
        return w, b

    p = {}
    p["w1"], p["b1"] = lin(ks[0], in_channels, dim)      # conv1.nn Linear(in, dim)
    p["g1"] = jnp.ones((dim,), _F32)                     # conv1 BatchNorm1d gamma
    p["be1"] = jnp.zeros((dim,), _F32)                   # conv1 BatchNorm1d beta
    p["w2"], p["b2"] = lin(ks[1], dim, dim)              # conv1.nn Linear(dim, dim)
    p["w3"], p["b3"] = lin(ks[2], dim, dim)              # conv2.nn Linear(dim, dim)
    p["g2"] = jnp.ones((dim,), _F32)
    p["be2"] = jnp.zeros((dim,), _F32)
    p["w4"], p["b4"] = lin(ks[3], dim, dim)              # conv2.nn Linear(dim, dim)
    p["wl1"], p["bl1"] = lin(ks[4], dim, dim)            # lin1
    p["wl2"], p["bl2"] = lin(ks[5], dim, out_channels)   # lin2
    return p


# ------------------------------ forward -------------------------------------
def gin_forward(x, edge_index, params, out_channels, eps_gin=0.0,
                force_tiled=False):
    N, _ = x.shape
    dim = params["w2"].shape[0]

    DP = _round_up(dim, 128)
    OP = _round_up(out_channels, 128)

    NP0 = _round_up(N, 128)
    use_fused = (not force_tiled) and NP0 <= 1024
    if use_fused:
        NP = NP0
        TM = TK = NP
    else:
        T = min(512, NP0)          # tile fits all of v5e/v6e/v7x comfortably
        NP = _round_up(N, T)
        TM = TK = T

    # ---- dense A_hat = A + (1+eps) I, built directly in bf16 (exact ints) ----
    src, dst = edge_index[0], edge_index[1]
    a = jnp.zeros((NP, NP), _BF16)
    a = a.at[dst, src].add(1.0)
    a = a.at[jnp.arange(N), jnp.arange(N)].add(1.0 + eps_gin)

    # ---- fold eval-mode BatchNorm1d into the preceding Linear ----
    w1f, b1f = fold_bn(params["w1"], params["b1"], params["g1"], params["be1"])
    w3f, b3f = fold_bn(params["w3"], params["b3"], params["g2"], params["be2"])

    # reassociated first matmul: kernel computes A @ (X W1); X W1 is tiny (N x dim)
    xw1 = jnp.dot(x, w1f)                              # f32 (N, dim)
    xw1_p = _pad2(xw1, NP, DP).astype(_BF16)

    b1 = _pad2(b1f, 1, DP)
    w2 = _pad2(params["w2"], DP, DP).astype(_BF16)
    b2 = _pad2(params["b2"], 1, DP)
    w3 = _pad2(w3f, DP, DP).astype(_BF16)
    b3 = _pad2(b3f, 1, DP)
    w4 = _pad2(params["w4"], DP, DP).astype(_BF16)
    b4 = _pad2(params["b4"], 1, DP)
    wl1 = _pad2(params["wl1"], DP, DP).astype(_BF16)
    bl1 = _pad2(params["bl1"], 1, DP)
    wl2 = _pad2(params["wl2"], DP, OP).astype(_BF16)
    bl2 = _pad2(params["bl2"], 1, OP)

    vmem_limit = 48 * 1024 * 1024      # headroom under v7x's 64 MiB physical VMEM

    if use_fused:
        # -------- single-step fused call: whole working set lives in VMEM --------
        def fs(shape):
            return pl.BlockSpec(shape, lambda i, _n=len(shape): (0,) * _n)

        out_p = pl.pallas_call(
            gin_fused_kernel,
            out_shape=jax.ShapeDtypeStruct((NP, OP), _F32),
            grid=(1,),
            in_specs=[
                fs((NP, NP)),                       # A_hat
                fs((NP, DP)),                       # X W1
                fs((1, DP)), fs((DP, DP)), fs((1, DP)),
                fs((DP, DP)), fs((1, DP)), fs((DP, DP)), fs((1, DP)),
                fs((DP, DP)), fs((1, DP)), fs((DP, OP)), fs((1, OP)),
            ],
            out_specs=fs((NP, OP)),
            compiler_params=pltpu.CompilerParams(
                dimension_semantics=("arbitrary",),
                vmem_limit_bytes=vmem_limit),
        )(a, xw1_p, b1, w2, b2, w3, b3, w4, b4, wl1, bl1, wl2, bl2)
        return out_p[:N, :out_channels]

    # -------- large-graph path: row tiles x K-tiled reduction with accumulator --
    grid = (NP // TM, NP // TK)
    cparams = pltpu.CompilerParams(
        dimension_semantics=("parallel", "arbitrary"),
        vmem_limit_bytes=vmem_limit)

    def cs(shape):                               # constant-index weights / biases
        return pl.BlockSpec(shape, lambda i, k: (0, 0))

    # pass 1: conv1 -> g1 = h1 @ W3 (bf16, (NP, DP)) in HBM
    g1 = pl.pallas_call(
        conv1_ktiled_kernel,
        out_shape=jax.ShapeDtypeStruct((NP, DP), _BF16),
        grid=grid,
        in_specs=[
            pl.BlockSpec((TM, TK), lambda i, k: (i, k)),   # A_hat tile
            pl.BlockSpec((TK, DP), lambda i, k: (k, 0)),   # (X W1) K-slab
            cs((1, DP)), cs((DP, DP)), cs((1, DP)), cs((DP, DP)),
        ],
        out_specs=pl.BlockSpec((TM, DP), lambda i, k: (i, 0)),
        scratch_shapes=[pltpu.VMEM((TM, DP), _F32)],
        compiler_params=cparams,
    )(a, xw1_p, b1, w2, b2, w3)

    # pass 2: conv2 aggregation (A @ g1) + MLP + lin1/relu + lin2
    out_p = pl.pallas_call(
        conv2_head_ktiled_kernel,
        out_shape=jax.ShapeDtypeStruct((NP, OP), _F32),
        grid=grid,
        in_specs=[
            pl.BlockSpec((TM, TK), lambda i, k: (i, k)),   # A_hat tile
            pl.BlockSpec((TK, DP), lambda i, k: (k, 0)),   # g1 K-slab
            cs((1, DP)), cs((DP, DP)), cs((1, DP)),
            cs((DP, DP)), cs((1, DP)), cs((DP, OP)), cs((1, OP)),
        ],
        out_specs=pl.BlockSpec((TM, OP), lambda i, k: (i, 0)),
        scratch_shapes=[pltpu.VMEM((TM, DP), _F32)],
        compiler_params=cparams,
    )(a, g1, b3, w4, b4, wl1, bl1, wl2, bl2)

    return out_p[:N, :out_channels]


# ------------------------------ reference -----------------------------------
def gin_reference(x, edge_index, params, eps_gin=0.0):
    """Pure-JAX reference mirroring the kernel's bf16/f32 op ordering."""
    N = x.shape[0]
    src, dst = edge_index[0], edge_index[1]
    a = jnp.zeros((N, N), _F32).at[dst, src].add(1.0)
    a = a.at[jnp.arange(N), jnp.arange(N)].add(1.0 + eps_gin)

    w1f, b1f = fold_bn(params["w1"], params["b1"], params["g1"], params["be1"])
    w3f, b3f = fold_bn(params["w3"], params["b3"], params["g2"], params["be2"])

    bf = lambda t: t.astype(_BF16)
    dot = lambda p, q: jnp.dot(bf(p), bf(q), preferred_element_type=_F32)

    xw1 = jnp.dot(x, w1f)                              # f32, as in the wrapper
    h = jnp.maximum(dot(a, xw1) + b1f, 0.0)
    h = jnp.maximum(dot(h, params["w2"]) + params["b2"], 0.0)
    g = dot(h, w3f)                                    # reassociated conv2
    h = jnp.maximum(dot(a, g) + b3f, 0.0)
    h = jnp.maximum(dot(h, params["w4"]) + params["b4"], 0.0)
    h = jnp.maximum(dot(h, params["wl1"]) + params["bl1"], 0.0)
    return dot(h, params["wl2"]) + params["bl2"]


if __name__ == "__main__":
    key = jax.random.PRNGKey(0)
    k_x, k_e, k_p = jax.random.split(key, 3)

    N = 48            # number of nodes
    in_channels = 8
    dim = 32
    out_channels = 4
    E = 128           # number of directed edges

    x = jax.random.normal(k_x, (N, in_channels), _F32)
    edge_index = jax.random.randint(k_e, (2, E), 0, N, dtype=jnp.int32)

    params = init_params(k_p, in_channels, dim, out_channels)

    ref = gin_reference(x, edge_index, params)

    # small-graph fused fast path (the one the shipped size uses)
    out = gin_forward(x, edge_index, params, out_channels)
    out = jax.block_until_ready(out)
    np.testing.assert_allclose(np.asarray(out), np.asarray(ref),
                               rtol=1e-3, atol=1e-3)

    # smoke-test the large-graph K-tiled path on the same inputs
    out_t = gin_forward(x, edge_index, params, out_channels, force_tiled=True)
    out_t = jax.block_until_ready(out_t)
    np.testing.assert_allclose(np.asarray(out_t), np.asarray(ref),
                               rtol=1e-3, atol=1e-3)

    print("KERNEL_OK")
</pallas_src>

<mosaic_0001>
module attributes {stable_mosaic.version = 11 : i64} {
  func.func @gin_fused_kernel(%arg0: i32, %arg1: memref<128x128xbf16, #tpu.memory_space<vmem>>, %arg2: memref<128x128xbf16, #tpu.memory_space<vmem>>, %arg3: memref<1x128xf32, #tpu.memory_space<vmem>>, %arg4: memref<128x128xbf16, #tpu.memory_space<vmem>>, %arg5: memref<1x128xf32, #tpu.memory_space<vmem>>, %arg6: memref<128x128xbf16, #tpu.memory_space<vmem>>, %arg7: memref<1x128xf32, #tpu.memory_space<vmem>>, %arg8: memref<128x128xbf16, #tpu.memory_space<vmem>>, %arg9: memref<1x128xf32, #tpu.memory_space<vmem>>, %arg10: memref<128x128xbf16, #tpu.memory_space<vmem>>, %arg11: memref<1x128xf32, #tpu.memory_space<vmem>>, %arg12: memref<128x128xbf16, #tpu.memory_space<vmem>>, %arg13: memref<1x128xf32, #tpu.memory_space<vmem>>, %arg14: memref<128x128xf32, #tpu.memory_space<vmem>>) attributes {dimension_semantics = [#tpu.dimension_semantics<arbitrary>], iteration_bounds = array<i64: 1>, scalar_prefetch = 0 : i64, scratch_operands = 0 : i64, tpu.core_type = #tpu.core_type<tc>, window_params = [{pipeline_mode = #tpu.pipeline_mode<synchronous>, transform_indices = @transform_0, window_bounds = array<i64: 128, 128>}, {pipeline_mode = #tpu.pipeline_mode<synchronous>, transform_indices = @transform_1, window_bounds = array<i64: 128, 128>}, {pipeline_mode = #tpu.pipeline_mode<synchronous>, transform_indices = @transform_2, window_bounds = array<i64: 1, 128>}, {pipeline_mode = #tpu.pipeline_mode<synchronous>, transform_indices = @transform_3, window_bounds = array<i64: 128, 128>}, {pipeline_mode = #tpu.pipeline_mode<synchronous>, transform_indices = @transform_4, window_bounds = array<i64: 1, 128>}, {pipeline_mode = #tpu.pipeline_mode<synchronous>, transform_indices = @transform_5, window_bounds = array<i64: 128, 128>}, {pipeline_mode = #tpu.pipeline_mode<synchronous>, transform_indices = @transform_6, window_bounds = array<i64: 1, 128>}, {pipeline_mode = #tpu.pipeline_mode<synchronous>, transform_indices = @transform_7, window_bounds = array<i64: 128, 128>}, {pipeline_mode = #tpu.pipeline_mode<synchronous>, transform_indices = @transform_8, window_bounds = array<i64: 1, 128>}, {pipeline_mode = #tpu.pipeline_mode<synchronous>, transform_indices = @transform_9, window_bounds = array<i64: 128, 128>}, {pipeline_mode = #tpu.pipeline_mode<synchronous>, transform_indices = @transform_10, window_bounds = array<i64: 1, 128>}, {pipeline_mode = #tpu.pipeline_mode<synchronous>, transform_indices = @transform_11, window_bounds = array<i64: 128, 128>}, {pipeline_mode = #tpu.pipeline_mode<synchronous>, transform_indices = @transform_12, window_bounds = array<i64: 1, 128>}, {pipeline_mode = #tpu.pipeline_mode<synchronous>, transform_indices = @transform_13, window_bounds = array<i64: 128, 128>}]} {
    %c0 = arith.constant 0 : index
    %c0_0 = arith.constant 0 : index
    %0 = vector.load %arg1[%c0, %c0_0] : memref<128x128xbf16, #tpu.memory_space<vmem>>, vector<128x128xbf16>
    %c0_1 = arith.constant 0 : index
    %c0_2 = arith.constant 0 : index
    %1 = vector.load %arg2[%c0_1, %c0_2] : memref<128x128xbf16, #tpu.memory_space<vmem>>, vector<128x128xbf16>
    %cst = arith.constant dense<0.000000e+00> : vector<128x128xf32>
    %2 = tpu.matmul %0, %1, %cst {dimension_numbers = #tpu.dot_dimension_numbers<[1], [0], [0], [1], [0, 0, 1, 1], [], []>} : vector<128x128xbf16>, vector<128x128xbf16>, vector<128x128xf32> -> vector<128x128xf32>
    %c0_3 = arith.constant 0 : index
    %c0_4 = arith.constant 0 : index
    %3 = vector.load %arg3[%c0_3, %c0_4] : memref<1x128xf32, #tpu.memory_space<vmem>>, vector<1x128xf32>
    %4 = vector.broadcast %3 : vector<1x128xf32> to vector<128x128xf32>
    %5 = arith.addf %2, %4 : vector<128x128xf32>
    %cst_5 = arith.constant 0.000000e+00 : f32
    %6 = vector.broadcast %cst_5 : f32 to vector<128x128xf32>
    %7 = arith.maximumf %5, %6 : vector<128x128xf32>
    %8 = arith.truncf %7 : vector<128x128xf32> to vector<128x128xbf16>
    %c0_6 = arith.constant 0 : index
    %c0_7 = arith.constant 0 : index
    %9 = vector.load %arg4[%c0_6, %c0_7] : memref<128x128xbf16, #tpu.memory_space<vmem>>, vector<128x128xbf16>
    %cst_8 = arith.constant dense<0.000000e+00> : vector<128x128xf32>
    %10 = tpu.matmul %8, %9, %cst_8 {dimension_numbers = #tpu.dot_dimension_numbers<[1], [0], [0], [1], [0, 0, 1, 1], [], []>} : vector<128x128xbf16>, vector<128x128xbf16>, vector<128x128xf32> -> vector<128x128xf32>
    %c0_9 = arith.constant 0 : index
    %c0_10 = arith.constant 0 : index
    %11 = vector.load %arg5[%c0_9, %c0_10] : memref<1x128xf32, #tpu.memory_space<vmem>>, vector<1x128xf32>
    %12 = vector.broadcast %11 : vector<1x128xf32> to vector<128x128xf32>
    %13 = arith.addf %10, %12 : vector<128x128xf32>
    %cst_11 = arith.constant 0.000000e+00 : f32
    %14 = vector.broadcast %cst_11 : f32 to vector<128x128xf32>
    %15 = arith.maximumf %13, %14 : vector<128x128xf32>
    %16 = arith.truncf %15 : vector<128x128xf32> to vector<128x128xbf16>
    %c0_12 = arith.constant 0 : index
    %c0_13 = arith.constant 0 : index
    %17 = vector.load %arg6[%c0_12, %c0_13] : memref<128x128xbf16, #tpu.memory_space<vmem>>, vector<128x128xbf16>
    %cst_14 = arith.constant dense<0.000000e+00> : vector<128x128xf32>
    %18 = tpu.matmul %16, %17, %cst_14 {dimension_numbers = #tpu.dot_dimension_numbers<[1], [0], [0], [1], [0, 0, 1, 1], [], []>} : vector<128x128xbf16>, vector<128x128xbf16>, vector<128x128xf32> -> vector<128x128xf32>
    %19 = arith.truncf %18 : vector<128x128xf32> to vector<128x128xbf16>
    %cst_15 = arith.constant dense<0.000000e+00> : vector<128x128xf32>
    %20 = tpu.matmul %0, %19, %cst_15 {dimension_numbers = #tpu.dot_dimension_numbers<[1], [0], [0], [1], [0, 0, 1, 1], [], []>} : vector<128x128xbf16>, vector<128x128xbf16>, vector<128x128xf32> -> vector<128x128xf32>
    %c0_16 = arith.constant 0 : index
    %c0_17 = arith.constant 0 : index
    %21 = vector.load %arg7[%c0_16, %c0_17] : memref<1x128xf32, #tpu.memory_space<vmem>>, vector<1x128xf32>
    %22 = vector.broadcast %21 : vector<1x128xf32> to vector<128x128xf32>
    %23 = arith.addf %20, %22 : vector<128x128xf32>
    %cst_18 = arith.constant 0.000000e+00 : f32
    %24 = vector.broadcast %cst_18 : f32 to vector<128x128xf32>
    %25 = arith.maximumf %23, %24 : vector<128x128xf32>
    %26 = arith.truncf %25 : vector<128x128xf32> to vector<128x128xbf16>
    %c0_19 = arith.constant 0 : index
    %c0_20 = arith.constant 0 : index
    %27 = vector.load %arg8[%c0_19, %c0_20] : memref<128x128xbf16, #tpu.memory_space<vmem>>, vector<128x128xbf16>
    %cst_21 = arith.constant dense<0.000000e+00> : vector<128x128xf32>
    %28 = tpu.matmul %26, %27, %cst_21 {dimension_numbers = #tpu.dot_dimension_numbers<[1], [0], [0], [1], [0, 0, 1, 1], [], []>} : vector<128x128xbf16>, vector<128x128xbf16>, vector<128x128xf32> -> vector<128x128xf32>
    %c0_22 = arith.constant 0 : index
    %c0_23 = arith.constant 0 : index
    %29 = vector.load %arg9[%c0_22, %c0_23] : memref<1x128xf32, #tpu.memory_space<vmem>>, vector<1x128xf32>
    %30 = vector.broadcast %29 : vector<1x128xf32> to vector<128x128xf32>
    %31 = arith.addf %28, %30 : vector<128x128xf32>
    %cst_24 = arith.constant 0.000000e+00 : f32
    %32 = vector.broadcast %cst_24 : f32 to vector<128x128xf32>
    %33 = arith.maximumf %31, %32 : vector<128x128xf32>
    %34 = arith.truncf %33 : vector<128x128xf32> to vector<128x128xbf16>
    %c0_25 = arith.constant 0 : index
    %c0_26 = arith.constant 0 : index
    %35 = vector.load %arg10[%c0_25, %c0_26] : memref<128x128xbf16, #tpu.memory_space<vmem>>, vector<128x128xbf16>
    %cst_27 = arith.constant dense<0.000000e+00> : vector<128x128xf32>
    %36 = tpu.matmul %34, %35, %cst_27 {dimension_numbers = #tpu.dot_dimension_numbers<[1], [0], [0], [1], [0, 0, 1, 1], [], []>} : vector<128x128xbf16>, vector<128x128xbf16>, vector<128x128xf32> -> vector<128x128xf32>
    %c0_28 = arith.constant 0 : index
    %c0_29 = arith.constant 0 : index
    %37 = vector.load %arg11[%c0_28, %c0_29] : memref<1x128xf32, #tpu.memory_space<vmem>>, vector<1x128xf32>
    %38 = vector.broadcast %37 : vector<1x128xf32> to vector<128x128xf32>
    %39 = arith.addf %36, %38 : vector<128x128xf32>
    %cst_30 = arith.constant 0.000000e+00 : f32
    %40 = vector.broadcast %cst_30 : f32 to vector<128x128xf32>
    %41 = arith.maximumf %39, %40 : vector<128x128xf32>
    %42 = arith.truncf %41 : vector<128x128xf32> to vector<128x128xbf16>
    %c0_31 = arith.constant 0 : index
    %c0_32 = arith.constant 0 : index
    %43 = vector.load %arg12[%c0_31, %c0_32] : memref<128x128xbf16, #tpu.memory_space<vmem>>, vector<128x128xbf16>
    %cst_33 = arith.constant dense<0.000000e+00> : vector<128x128xf32>
    %44 = tpu.matmul %42, %43, %cst_33 {dimension_numbers = #tpu.dot_dimension_numbers<[1], [0], [0], [1], [0, 0, 1, 1], [], []>} : vector<128x128xbf16>, vector<128x128xbf16>, vector<128x128xf32> -> vector<128x128xf32>
    %c0_34 = arith.constant 0 : index
    %c0_35 = arith.constant 0 : index
    %45 = vector.load %arg13[%c0_34, %c0_35] : memref<1x128xf32, #tpu.memory_space<vmem>>, vector<1x128xf32>
    %46 = vector.broadcast %45 : vector<1x128xf32> to vector<128x128xf32>
    %47 = arith.addf %44, %46 : vector<128x128xf32>
    %c0_36 = arith.constant 0 : index
    %c0_37 = arith.constant 0 : index
    %48 = vector.load %arg14[%c0_36, %c0_37] : memref<128x128xf32, #tpu.memory_space<vmem>>, vector<128x128xf32>
    tpu.vector_store %arg14[%c0_36, %c0_37], %47 {strides = array<i32>} : memref<128x128xf32, #tpu.memory_space<vmem>>, vector<128x128xf32>,
    return
  }
  func.func @transform_0(%arg0: i32) -> (i32, i32) {
    %c0_i32 = arith.constant 0 : i32
    %c0_i32_0 = arith.constant 0 : i32
    %c0_i32_1 = arith.constant 0 : i32
    return %c0_i32, %c0_i32_0 : i32, i32
  }
  func.func @transform_1(%arg0: i32) -> (i32, i32) {
    %c0_i32 = arith.constant 0 : i32
    %c0_i32_0 = arith.constant 0 : i32
    %c0_i32_1 = arith.constant 0 : i32
    return %c0_i32, %c0_i32_0 : i32, i32
  }
  func.func @transform_2(%arg0: i32) -> (i32, i32) {
    %c0_i32 = arith.constant 0 : i32
    %c0_i32_0 = arith.constant 0 : i32
    %c0_i32_1 = arith.constant 0 : i32
    return %c0_i32, %c0_i32_0 : i32, i32
  }
  func.func @transform_3(%arg0: i32) -> (i32, i32) {
    %c0_i32 = arith.constant 0 : i32
    %c0_i32_0 = arith.constant 0 : i32
    %c0_i32_1 = arith.constant 0 : i32
    return %c0_i32, %c0_i32_0 : i32, i32
  }
  func.func @transform_4(%arg0: i32) -> (i32, i32) {
    %c0_i32 = arith.constant 0 : i32
    %c0_i32_0 = arith.constant 0 : i32
    %c0_i32_1 = arith.constant 0 : i32
    return %c0_i32, %c0_i32_0 : i32, i32
  }
  func.func @transform_5(%arg0: i32) -> (i32, i32) {
    %c0_i32 = arith.constant 0 : i32
    %c0_i32_0 = arith.constant 0 : i32
    %c0_i32_1 = arith.constant 0 : i32
    return %c0_i32, %c0_i32_0 : i32, i32
  }
  func.func @transform_6(%arg0: i32) -> (i32, i32) {
    %c0_i32 = arith.constant 0 : i32
    %c0_i32_0 = arith.constant 0 : i32
    %c0_i32_1 = arith.constant 0 : i32
    return %c0_i32, %c0_i32_0 : i32, i32
  }
  func.func @transform_7(%arg0: i32) -> (i32, i32) {
    %c0_i32 = arith.constant 0 : i32
    %c0_i32_0 = arith.constant 0 : i32
    %c0_i32_1 = arith.constant 0 : i32
    return %c0_i32, %c0_i32_0 : i32, i32
  }
  func.func @transform_8(%arg0: i32) -> (i32, i32) {
    %c0_i32 = arith.constant 0 : i32
    %c0_i32_0 = arith.constant 0 : i32
    %c0_i32_1 = arith.constant 0 : i32
    return %c0_i32, %c0_i32_0 : i32, i32
  }
  func.func @transform_9(%arg0: i32) -> (i32, i32) {
    %c0_i32 = arith.constant 0 : i32
    %c0_i32_0 = arith.constant 0 : i32
    %c0_i32_1 = arith.constant 0 : i32
    return %c0_i32, %c0_i32_0 : i32, i32
  }
  func.func @transform_10(%arg0: i32) -> (i32, i32) {
    %c0_i32 = arith.constant 0 : i32
    %c0_i32_0 = arith.constant 0 : i32
    %c0_i32_1 = arith.constant 0 : i32
    return %c0_i32, %c0_i32_0 : i32, i32
  }
  func.func @transform_11(%arg0: i32) -> (i32, i32) {
    %c0_i32 = arith.constant 0 : i32
    %c0_i32_0 = arith.constant 0 : i32
    %c0_i32_1 = arith.constant 0 : i32
    return %c0_i32, %c0_i32_0 : i32, i32
  }
  func.func @transform_12(%arg0: i32) -> (i32, i32) {
    %c0_i32 = arith.constant 0 : i32
    %c0_i32_0 = arith.constant 0 : i32
    %c0_i32_1 = arith.constant 0 : i32
    return %c0_i32, %c0_i32_0 : i32, i32
  }
  func.func @transform_13(%arg0: i32) -> (i32, i32) {
    %c0_i32 = arith.constant 0 : i32
    %c0_i32_0 = arith.constant 0 : i32
    %c0_i32_1 = arith.constant 0 : i32
    return %c0_i32, %c0_i32_0 : i32, i32
  }
}

</mosaic_0001>

<bundles_post_ra>
// kernel: tpu_custom_call.1
= control target key start
LH: loop header
LB: loop body
LE: loop exit
PB: predicated region body
PF: predicated region fallthrough
CT: control target
= control target key end

     0   :  { %18 = vsyncpa [#allocation3], 0  ;;  %s2309_s0 = inlined_call_operand.hbm [shape: bf16[128,128], index: 0, kind: input, shape index: {}]   ;;  %s2310_s1 = inlined_call_operand.hbm [shape: bf16[128,128], index: 1, kind: input, shape index: {}]   ;;  %s2311_s2 = inlined_call_operand.vmem [shape: f32[1,128], index: 2, kind: input, shape index: {}]   ;;  %s2312_s3 = inlined_call_operand.hbm [shape: bf16[128,128], index: 3, kind: input, shape index: {}]   ;;  %s2313_s4 = inlined_call_operand.vmem [shape: f32[1,128], index: 4, kind: input, shape index: {}]   ;;  %s2314_s5 = inlined_call_operand.hbm [shape: bf16[128,128], index: 5, kind: input, shape index: {}]   ;;  %s2315_s6 = inlined_call_operand.vmem [shape: f32[1,128], index: 6, kind: input, shape index: {}]   ;;  %s2316_s7 = inlined_call_operand.hbm [shape: bf16[128,128], index: 7, kind: input, shape index: {}]   ;;  %s2317_s8 = inlined_call_operand.vmem [shape: f32[1,128], index: 8, kind: input, shape index: {}]   ;;  %s2318_s9 = inlined_call_operand.hbm [shape: bf16[128,128], index: 9, kind: input, shape index: {}]   ;;  %s2319_s10 = inlined_call_operand.vmem [shape: f32[1,128], index: 10, kind: input, shape index: {}]   ;;  %s2320_s11 = inlined_call_operand.hbm [shape: bf16[128,128], index: 11, kind: input, shape index: {}]   ;;  %s2321_s12 = inlined_call_operand.vmem [shape: f32[1,128], index: 12, kind: input, shape index: {}]   ;;  %s2322_s13 = inlined_call_operand.hbm [shape: f32[128,128], index: 13, kind: output, shape index: {}]  }
   0x1   :  { %19 = vsyncpa [#allocation6], 0 }
   0x2   :  { %20 = vsyncpa [#allocation9], 0 }
   0x3   :  { %21 = vsyncpa [#allocation12], 0 }
   0x4   :  { %22 = vsyncpa [#allocation4], 0  ;;  %s2126_s25 = smov [#allocation5]   ;;  %s2127_s27 = smov [#allocation8]  }
   0x5   :  { %s40_s26 = sshll.u32 %s2126_s25, 4  ;;  %s68_s28 = sshll.u32 %s2127_s27, 4  ;;  %s41_s26 = int_to_ptr.vmem [resolvable:$true] %s40_s26  ;;  %s69_s28 = int_to_ptr.vmem [resolvable:$true] %s68_s28 }
   0x6   :  { %s1964_s29 = scalar_lea.vmem %s41_s26, 1024  ;;  %p1969_p1 = scmp.lt.s32.totalorder %s41_s26, %s41_s26 }
   0x7   :  { %p1965_p0 = scmp.ne.s32.totalorder %s41_s26, %s1964_s29  ;;  %p1970_p2 = scmp.lt.s32.totalorder %s1964_s29, %s1964_s29 }
   0x9   :  { %p1971_p3 = por %p1970_p2, %p1969_p1 }
   0xb   :  { %p1972_p4 = pnand %p1971_p3, %p1965_p0 }
   0xd   :  { %1975 = shalt.err (!%p1972_p4)
}
   0xe   :  { %s2128_s30 = smov 64   ;;  %s2129_s14 = smov 4  }
   0xf   :  { %46 = dma.hbm_to_vmem [thread:$0]  %s2310_s1, 1024, %s41_s26, [#allocation6], %s2128_s30, %s2128_s30, %s2129_s14  }
  0x10   :  { %s1984_s17 = scalar_lea.vmem %s69_s28, 1024  ;;  %p1989_p6 = scmp.lt.s32.totalorder %s69_s28, %s69_s28 }
  0x11   :  { %p1985_p5 = scmp.ne.s32.totalorder %s69_s28, %s1984_s17  ;;  %p1990_p7 = scmp.lt.s32.totalorder %s1984_s17, %s1984_s17 }
  0x13   :  { %p1991_p8 = por %p1990_p7, %p1989_p6 }
  0x15   :  { %p1992_p9 = pnand %p1991_p8, %p1985_p5 }
  0x17   :  { %1995 = shalt.err (!%p1992_p9)
}
  0x18   :  { %74 = dma.hbm_to_vmem [thread:$0]  %s2314_s5, 1024, %s69_s28, [#allocation9], %s2128_s30, %s2128_s30, %s2129_s14  }
  0x19   :  { %s2130_s20 = smov [#allocation11]   ;;  %s2131_s22 = smov [#allocation2]  }
  0x1a   :  { %s96_s21 = sshll.u32 %s2130_s20, 4  ;;  %s28_s23 = sshll.u32 %s2131_s22, 4  ;;  %s97_s21 = int_to_ptr.vmem [resolvable:$true] %s96_s21  ;;  %s29_s23 = int_to_ptr.vmem [resolvable:$true] %s28_s23 }
  0x1b   :  { %s2004_s1 = scalar_lea.vmem %s97_s21, 1024  ;;  %p2009_p11 = scmp.lt.s32.totalorder %s97_s21, %s97_s21 }
  0x1c   :  { %p2005_p10 = scmp.ne.s32.totalorder %s97_s21, %s2004_s1  ;;  %p2010_p12 = scmp.lt.s32.totalorder %s2004_s1, %s2004_s1 }
  0x1e   :  { %p2011_p13 = por %p2010_p12, %p2009_p11 }
  0x20   :  { %p2012_p0 = pnand %p2011_p13, %p2005_p10 }
  0x22   :  { %2015 = shalt.err (!%p2012_p0)
}
  0x23   :  { %102 = dma.hbm_to_vmem [thread:$0]  %s2318_s9, 1024, %s97_s21, [#allocation12], %s2128_s30, %s2128_s30, %s2129_s14  }
  0x24   :  { %s2024_s5 = scalar_lea.vmem %s29_s23, 1024  ;;  %p2029_p2 = scmp.lt.s32.totalorder %s29_s23, %s29_s23 }
  0x25   :  { %p2025_p1 = scmp.ne.s32.totalorder %s29_s23, %s2024_s5  ;;  %p2030_p3 = scmp.lt.s32.totalorder %s2024_s5, %s2024_s5 }
  0x27   :  { %p2031_p4 = por %p2030_p3, %p2029_p2 }
  0x29   :  { %p2032_p5 = pnand %p2031_p4, %p2025_p1 }
  0x2b   :  { %2035 = shalt.err (!%p2032_p5)
}
  0x2c   :  { %34 = dma.hbm_to_vmem [thread:$0]  %s2309_s0, 1024, %s29_s23, [#allocation3], %s2128_s30, %s2128_s30, %s2129_s14  }
  0x2d   :  { %s2132_s28 = smov [#allocation7]   ;;  %s2133_s15 = smov [#allocation10]  }
  0x2e   :  { %s54_s29 = sshll.u32 %s2132_s28, 4  ;;  %s82_s16 = sshll.u32 %s2133_s15, 4  ;;  %s55_s29 = int_to_ptr.vmem [resolvable:$true] %s54_s29  ;;  %s83_s16 = int_to_ptr.vmem [resolvable:$true] %s82_s16 }
  0x2f   :  { %s2044_s9 = scalar_lea.vmem %s55_s29, 1024  ;;  %p2049_p7 = scmp.lt.s32.totalorder %s55_s29, %s55_s29 }
  0x30   :  { %p2045_p6 = scmp.ne.s32.totalorder %s55_s29, %s2044_s9  ;;  %p2050_p8 = scmp.lt.s32.totalorder %s2044_s9, %s2044_s9 }
  0x32   :  { %p2051_p9 = por %p2050_p8, %p2049_p7 }
  0x34   :  { %p2052_p10 = pnand %p2051_p9, %p2045_p6 }
  0x36   :  { %2055 = shalt.err (!%p2052_p10)
}
  0x37   :  { %60 = dma.hbm_to_vmem [thread:$0]  %s2312_s3, 1024, %s55_s29, [#allocation6], %s2128_s30, %s2128_s30, %s2129_s14  }
  0x38   :  { %s2064_s0 = scalar_lea.vmem %s83_s16, 1024  ;;  %p2069_p12 = scmp.lt.s32.totalorder %s83_s16, %s83_s16 }
  0x39   :  { %p2065_p11 = scmp.ne.s32.totalorder %s83_s16, %s2064_s0  ;;  %p2070_p13 = scmp.lt.s32.totalorder %s2064_s0, %s2064_s0 }
  0x3b   :  { %p2071_p0 = por %p2070_p13, %p2069_p12 }
  0x3d   :  { %p2072_p1 = pnand %p2071_p0, %p2065_p11 }
  0x3f   :  { %2075 = shalt.err (!%p2072_p1)
}
  0x40   :  { %88 = dma.hbm_to_vmem [thread:$0]  %s2316_s7, 1024, %s83_s16, [#allocation9], %s2128_s30, %s2128_s30, %s2129_s14  }
  0x41   :  { %s2134_s21 = smov [#allocation13]  }
  0x42   :  { %s110_s22 = sshll.u32 %s2134_s21, 4  ;;  %s111_s22 = int_to_ptr.vmem [resolvable:$true] %s110_s22 }
  0x43   :  { %s2084_s23 = scalar_lea.vmem %s111_s22, 1024  ;;  %p2089_p3 = scmp.lt.s32.totalorder %s111_s22, %s111_s22 }
  0x44   :  { %p2085_p2 = scmp.ne.s32.totalorder %s111_s22, %s2084_s23  ;;  %p2090_p4 = scmp.lt.s32.totalorder %s2084_s23, %s2084_s23 }
  0x46   :  { %p2091_p5 = por %p2090_p4, %p2089_p3 }
  0x48   :  { %p2092_p6 = pnand %p2091_p5, %p2085_p2 }
  0x4a   :  { %2095 = shalt.err (!%p2092_p6)
}
  0x4b   :  { %116 = dma.hbm_to_vmem [thread:$0]  %s2320_s11, 1024, %s111_s22, [#allocation12], %s2128_s30, %s2128_s30, %s2129_s14  }
  0x4c   :  { %2116 = dma.done.wait [#allocation3], 1024  }
  0x4d   :  { %2117 = vsyncadd [#allocation3], 4294966272 }
  0x4e   :  { %2118 = dma.done.wait [#allocation6], 2048  }
  0x4f   :  { %2119 = vsyncadd [#allocation6], 4294965248 }
  0x50   :  { %2120 = dma.done.wait [#allocation9], 2048  }
  0x51   :  { %2121 = vsyncadd [#allocation9], 4294965248 }
  0x52   :  { %2122 = dma.done.wait [#allocation12], 2048  }
  0x53   :  { %2123 = vsyncadd [#allocation12], 4294965248  ;;  %v1900_v0 = vld [vmem:[#allocation5 + $0x38] sm:$0xff]   ;;  %v1901_v1 = vld [vmem:[#allocation5 + $0x30] sm:$0xff]  }
  0x54   :  { %1648 = vmatprep.subr.bf16.mxu0 %v1900_v0  ;;  %v1902_v2 = vld [vmem:[#allocation5 + $0x28] sm:$0xff]   ;;  %v1903_v3 = vld [vmem:[#allocation5 + $0x20] sm:$0xff]   ;;  %v1904_v5 = vld [vmem:[#allocation5 + $0x18] sm:$0xff]  }
  0x55   :  { %1649 = vmatpush3.bf16.msra.mxu0 %v1900_v0  ;;  %v2250_v4 = vld [vmem:[#allocation2] sm:$0xff]   ;;  %v1905_v6 = vld [vmem:[#allocation5 + $0x10] sm:$0xff]   ;;  %v1916_v7 = vld [vmem:[#allocation7 + $0x38] sm:$0xff]  }
  0x56   :  { %1650 = vmatprep.subr.bf16.mxu0 %v1901_v1  ;;  %1664 = vmatprep.mubr.bf16.mxu0 %v2250_v4  ;;  %v1917_v8 = vld [vmem:[#allocation7 + $0x30] sm:$0xff]   ;;  %v1906_v9 = vld [vmem:[#allocation5 + $0x8] sm:$0xff]   ;;  %v1907_v11 = vld [vmem:[#allocation5] sm:$0xff]  }
  0x57   :  { %1680 = vmatprep.subr.bf16.mxu1 %v1916_v7  ;;  %v1918_v10 = vld [vmem:[#allocation7 + $0x28] sm:$0xff]   ;;  %v1919_v12 = vld [vmem:[#allocation7 + $0x20] sm:$0xff]   ;;  %v1920_v13 = vld [vmem:[#allocation7 + $0x18] sm:$0xff]  }
  0x58   :  { %1681 = vmatpush3.bf16.msra.mxu1 %v1916_v7  ;;  %v2253_v14 = vld [vmem:[#allocation2 + $0x8] sm:$0xff]   ;;  %v2255_v15 = vld [vmem:[#allocation2 + $0x10] sm:$0xff]   ;;  %v2259_v16 = vld [vmem:[#allocation2 + $0x18] sm:$0xff]  }
  0x59   :  { %1651 = vmatpush3.bf16.msra.mxu0 %v1901_v1  ;;  %1682 = vmatprep.subr.bf16.mxu1 %v1917_v8  ;;  %v2261_v17 = vld [vmem:[#allocation2 + $0x20] sm:$0xff]   ;;  %v2265_v18 = vld [vmem:[#allocation2 + $0x28] sm:$0xff]   ;;  %v2267_v19 = vld [vmem:[#allocation2 + $0x30] sm:$0xff]  }
  0x5a   :  { %1652 = vmatprep.subr.bf16.mxu0 %v1902_v2  ;;  %v2271_v20 = vld [vmem:[#allocation2 + $0x38] sm:$0xff]   ;;  %v1921_v21 = vld [vmem:[#allocation7 + $0x10] sm:$0xff]   ;;  %v1922_v22 = vld [vmem:[#allocation7 + $0x8] sm:$0xff]  }
  0x5b   :  { %v1923_v23 = vld [vmem:[#allocation7] sm:$0xff]   ;;  %v1924_v24 = vld [vmem:[#allocation8 + $0x38] sm:$0xff]   ;;  %v1925_v25 = vld [vmem:[#allocation8 + $0x30] sm:$0xff]  }
  0x5c   :  { %1683 = vmatpush3.bf16.msra.mxu1 %v1917_v8  ;;  %v1926_v26 = vld [vmem:[#allocation8 + $0x28] sm:$0xff]   ;;  %v1927_v27 = vld [vmem:[#allocation8 + $0x20] sm:$0xff]   ;;  %v1928_v28 = vld [vmem:[#allocation8 + $0x18] sm:$0xff]  }
  0x5d   :  { %1653 = vmatpush3.bf16.msra.mxu0 %v1902_v2  ;;  %1684 = vmatprep.subr.bf16.mxu1 %v1918_v10  ;;  %v1474_v31 = vld [vmem:[%s2311_s2] ss:$0 sm:$0xff] }
  0x5e   :  { %1654 = vmatprep.subr.bf16.mxu0 %v1903_v3 }
  0x60   :  { %1685 = vmatpush3.bf16.msra.mxu1 %v1918_v10 }
  0x61   :  { %1655 = vmatpush3.bf16.msra.mxu0 %v1903_v3  ;;  %1686 = vmatprep.subr.bf16.mxu1 %v1919_v12 }
  0x62   :  { %1656 = vmatprep.subr.bf16.mxu0 %v1904_v5 }
  0x64   :  { %1687 = vmatpush3.bf16.msra.mxu1 %v1919_v12 }
  0x65   :  { %1657 = vmatpush3.bf16.msra.mxu0 %v1904_v5  ;;  %1688 = vmatprep.subr.bf16.mxu1 %v1920_v13 }
  0x66   :  { %1658 = vmatprep.subr.bf16.mxu0 %v1905_v6 }
  0x68   :  { %1689 = vmatpush3.bf16.msra.mxu1 %v1920_v13 }
  0x69   :  { %1659 = vmatpush3.bf16.msra.mxu0 %v1905_v6  ;;  %1690 = vmatprep.subr.bf16.mxu1 %v1921_v21 }
  0x6a   :  { %1660 = vmatprep.subr.bf16.mxu0 %v1906_v9 }
  0x6c   :  { %1691 = vmatpush3.bf16.msra.mxu1 %v1921_v21 }
  0x6d   :  { %1661 = vmatpush3.bf16.msra.mxu0 %v1906_v9  ;;  %1692 = vmatprep.subr.bf16.mxu1 %v1922_v22 }
  0x6e   :  { %1662 = vmatprep.subr.bf16.mxu0 %v1907_v11 }
  0x70   :  { %1693 = vmatpush3.bf16.msra.mxu1 %v1922_v22 }
  0x71   :  { %1663 = vmatpush3.bf16.msra.mxu0 %v1907_v11  ;;  %1694 = vmatprep.subr.bf16.mxu1 %v1923_v23 }
  0x72   :  { %1712 = vmatprep.subr.bf16.mxu0 %v1924_v24 }
  0x74   :  { %1665 = vmatmul.mubr.bf16.vlgmr.msra.gmra.mxu0 %v2253_v14  ;;  %1695 = vmatpush3.bf16.msra.mxu1 %v1923_v23 }
  0x75   :  { %1668 = vmatprep.mubr.bf16.mxu0 %v2255_v15  ;;  %1713 = vmatpush3.bf16.msra.mxu0 %v1924_v24 }
  0x76   :  { %1714 = vmatprep.subr.bf16.mxu0 %v1925_v25 }
  0x79   :  { %1715 = vmatpush3.bf16.msra.mxu0 %v1925_v25 }
  0x7a   :  { %1716 = vmatprep.subr.bf16.mxu0 %v1926_v26 }
  0x7c   :  { %1669 = vmatmul.mubr.bf16.gmra.mxu0 %v2259_v16 }
  0x7d   :  { %1672 = vmatprep.mubr.bf16.mxu0 %v2261_v17  ;;  %1717 = vmatpush3.bf16.msra.mxu0 %v1926_v26 }
  0x7e   :  { %1718 = vmatprep.subr.bf16.mxu0 %v1927_v27 }
  0x81   :  { %1719 = vmatpush3.bf16.msra.mxu0 %v1927_v27 }
  0x82   :  { %1720 = vmatprep.subr.bf16.mxu0 %v1928_v28 }
  0x84   :  { %1673 = vmatmul.mubr.bf16.gmra.mxu0 %v2265_v18 }
  0x85   :  { %1676 = vmatprep.mubr.bf16.mxu0 %v2267_v19  ;;  %1721 = vmatpush3.bf16.msra.mxu0 %v1928_v28 }
  0x8c   :  { %1677 = vmatmul.mubr.bf16.gmra.mxu0 %v2271_v20 }
 0x134   :  { %v1666_v29 = vpop.f32.mrf.mxu0 }
 0x135   :  { %v319_v35 = vadd.f32 %v1666_v29, %v1474_v31 }
 0x136   :  { %v310_v30 = vpop.f32.mrf.mxu0 }
 0x137   :  { %v311_v33 = vadd.f32 %v1474_v31, %v310_v30  ;;  %v375_v42 = vmax.f32 %v319_v35, 0.0  ;;  %v1929_v30 = vld [vmem:[#allocation8 + $0x10] sm:$0xff]   ;;  %v1491_v35 = vld [vmem:[%s2313_s4] ss:$0 sm:$0xff] }
 0x138   :  { %v1667_v32 = vpop.f32.mrf.mxu0  ;;  %1722 = vmatprep.subr.bf16.mxu0 %v1929_v30 }
 0x139   :  { %v322_v34 = vadd.f32 %v1667_v32, %v1474_v31  ;;  %v373_v40 = vmax.f32 %v311_v33, 0.0  ;;  %1723 = vmatpush3.bf16.msra.mxu0 %v1929_v30  ;;  %v1930_v32 = vld [vmem:[#allocation8 + $0x8] sm:$0xff]   ;;  %v1931_v33 = vld [vmem:[#allocation8] sm:$0xff]  }
 0x13a   :  { %v313_v36 = vpop.f32.mrf.mxu0  ;;  %1724 = vmatprep.subr.bf16.mxu0 %v1930_v32 }
 0x13b   :  { %v314_v37 = vadd.f32 %v1474_v31, %v313_v36  ;;  %v376_v38 = vmax.f32 %v322_v34, 0.0 }
 0x13c   :  { %v1670_v39 = vpop.f32.mrf.mxu0 }
 0x13d   :  { %v374_v41 = vmax.f32 %v314_v37, 0.0  ;;  %v390_v45 = vpack.c.bf16 %v376_v38, %v375_v42  ;;  %v335_v49 = vadd.f32 %v1670_v39, %v1474_v31  ;;  %1725 = vmatpush3.bf16.msra.mxu0 %v1930_v32 }
 0x13e   :  { %v326_v43 = vpop.f32.mrf.mxu0  ;;  %1726 = vmatprep.subr.bf16.mxu0 %v1931_v33 }
 0x13f   :  { %v389_v44 = vpack.c.bf16 %v374_v41, %v373_v40  ;;  %v327_v47 = vadd.f32 %v1474_v31, %v326_v43  ;;  %v379_v56 = vmax.f32 %v335_v49, 0.0 }
 0x140   :  { %v1671_v46 = vpop.f32.mrf.mxu0 }
 0x141   :  { %v338_v48 = vadd.f32 %v1671_v46, %v1474_v31  ;;  %1696 = vmatprep.mubr.bf16.mxu1 %v389_v44  ;;  %v377_v54 = vmax.f32 %v327_v47, 0.0  ;;  %1727 = vmatpush3.bf16.msra.mxu0 %v1931_v33 }
 0x142   :  { %v329_v50 = vpop.f32.mrf.mxu0  ;;  %1697 = vmatmul.mubr.bf16.vlgmr.msra.gmra.mxu1 %v390_v45 }
 0x143   :  { %v330_v51 = vadd.f32 %v1474_v31, %v329_v50  ;;  %v380_v52 = vmax.f32 %v338_v48, 0.0 }
 0x144   :  { %v1674_v53 = vpop.f32.mrf.mxu0 }
 0x145   :  { %v378_v55 = vmax.f32 %v330_v51, 0.0  ;;  %v392_v59 = vpack.c.bf16 %v380_v52, %v379_v56  ;;  %v351_v63 = vadd.f32 %v1674_v53, %v1474_v31 }
 0x146   :  { %v342_v57 = vpop.f32.mrf.mxu0 }
 0x147   :  { %v391_v58 = vpack.c.bf16 %v378_v55, %v377_v54  ;;  %v343_v61 = vadd.f32 %v1474_v31, %v342_v57  ;;  %v383_v7 = vmax.f32 %v351_v63, 0.0 }
 0x148   :  { %v1675_v60 = vpop.f32.mrf.mxu0 }
 0x149   :  { %v354_v62 = vadd.f32 %v1675_v60, %v1474_v31  ;;  %1700 = vmatprep.mubr.bf16.mxu1 %v391_v58  ;;  %v381_v5 = vmax.f32 %v343_v61, 0.0 }
 0x14a   :  { %v345_v0 = vpop.f32.mrf.mxu0  ;;  %1701 = vmatmul.mubr.bf16.gmra.mxu1 %v392_v59 }
 0x14b   :  { %v346_v1 = vadd.f32 %v1474_v31, %v345_v0  ;;  %v384_v2 = vmax.f32 %v354_v62, 0.0 }
 0x14c   :  { %v1678_v3 = vpop.f32.mrf.mxu0 }
 0x14d   :  { %v382_v6 = vmax.f32 %v346_v1, 0.0  ;;  %v394_v10 = vpack.c.bf16 %v384_v2, %v383_v7  ;;  %v367_v21 = vadd.f32 %v1678_v3, %v1474_v31 }
 0x14e   :  { %v358_v8 = vpop.f32.mrf.mxu0 }
 0x14f   :  { %v393_v9 = vpack.c.bf16 %v382_v6, %v381_v5  ;;  %v359_v12 = vadd.f32 %v1474_v31, %v358_v8  ;;  %v387_v27 = vmax.f32 %v367_v21, 0.0 }
 0x150   :  { %v1679_v11 = vpop.f32.mrf.mxu0 }
 0x151   :  { %v370_v13 = vadd.f32 %v1679_v11, %v1474_v31  ;;  %1704 = vmatprep.mubr.bf16.mxu1 %v393_v9  ;;  %v385_v25 = vmax.f32 %v359_v12, 0.0 }
 0x152   :  { %v361_v22 = vpop.f32.mrf.mxu0  ;;  %1705 = vmatmul.mubr.bf16.gmra.mxu1 %v394_v10 }
 0x153   :  { %v362_v23 = vadd.f32 %v1474_v31, %v361_v22  ;;  %v388_v24 = vmax.f32 %v370_v13, 0.0 }
 0x155   :  { %v386_v26 = vmax.f32 %v362_v23, 0.0  ;;  %v396_v29 = vpack.c.bf16 %v388_v24, %v387_v27 }
 0x157   :  { %v395_v28 = vpack.c.bf16 %v386_v26, %v385_v25 }
 0x159   :  { %1708 = vmatprep.mubr.bf16.mxu1 %v395_v28 }
 0x15a   :  { %1709 = vmatmul.mubr.bf16.gmra.mxu1 %v396_v29 }
 0x15b   :  { %1760 = vmatprep.mubr.bf16.mxu1 %v2250_v4 }
 0x202   :  { %v1698_v31 = vpop.f32.mrf.mxu1 }
 0x203   :  { %v511_v39 = vadd.f32 %v1698_v31, %v1491_v35  ;;  %v1932_v31 = vld [vmem:[#allocation10 + $0x38] sm:$0xff]  }
 0x204   :  { %v502_v34 = vpop.f32.mrf.mxu1  ;;  %1776 = vmatprep.subr.bf16.mxu0 %v1932_v31 }
 0x205   :  { %v503_v37 = vadd.f32 %v1491_v35, %v502_v34  ;;  %v567_v45 = vmax.f32 %v511_v39, 0.0  ;;  %v1933_v34 = vld [vmem:[#allocation10 + $0x30] sm:$0xff]  }
 0x206   :  { %v1699_v36 = vpop.f32.mrf.mxu1 }
 0x207   :  { %v514_v38 = vadd.f32 %v1699_v36, %v1491_v35  ;;  %v565_v43 = vmax.f32 %v503_v37, 0.0  ;;  %v1934_v36 = vld [vmem:[#allocation10 + $0x28] sm:$0xff]   ;;  %v1935_v37 = vld [vmem:[#allocation10 + $0x20] sm:$0xff]  }
 0x208   :  { %v505_v4 = vpop.f32.mrf.mxu1 }
 0x209   :  { %v506_v40 = vadd.f32 %v1491_v35, %v505_v4  ;;  %v568_v41 = vmax.f32 %v514_v38, 0.0 }
 0x20a   :  { %v1702_v42 = vpop.f32.mrf.mxu1 }
 0x20b   :  { %v566_v44 = vmax.f32 %v506_v40, 0.0  ;;  %v582_v48 = vpack.c.bf16 %v568_v41, %v567_v45  ;;  %v527_v52 = vadd.f32 %v1702_v42, %v1491_v35 }
 0x20c   :  { %v518_v46 = vpop.f32.mrf.mxu1 }
 0x20d   :  { %v581_v47 = vpack.c.bf16 %v566_v44, %v565_v43  ;;  %v519_v50 = vadd.f32 %v1491_v35, %v518_v46  ;;  %v571_v59 = vmax.f32 %v527_v52, 0.0 }
 0x20e   :  { %v1703_v49 = vpop.f32.mrf.mxu1 }
 0x20f   :  { %v530_v51 = vadd.f32 %v1703_v49, %v1491_v35  ;;  %1728 = vmatprep.mubr.bf16.mxu0 %v581_v47  ;;  %v569_v57 = vmax.f32 %v519_v50, 0.0 }
 0x210   :  { %v521_v53 = vpop.f32.mrf.mxu1  ;;  %1729 = vmatmul.mubr.bf16.vlgmr.msra.gmra.mxu0 %v582_v48 }
 0x211   :  { %v522_v54 = vadd.f32 %v1491_v35, %v521_v53  ;;  %v572_v55 = vmax.f32 %v530_v51, 0.0  ;;  %1777 = vmatpush3.bf16.msra.mxu0 %v1932_v31 }
 0x212   :  { %v1706_v56 = vpop.f32.mrf.mxu1  ;;  %1778 = vmatprep.subr.bf16.mxu0 %v1933_v34 }
 0x213   :  { %v570_v58 = vmax.f32 %v522_v54, 0.0  ;;  %v584_v62 = vpack.c.bf16 %v572_v55, %v571_v59  ;;  %v543_v2 = vadd.f32 %v1706_v56, %v1491_v35 }
 0x214   :  { %v534_v60 = vpop.f32.mrf.mxu1 }
 0x215   :  { %v583_v61 = vpack.c.bf16 %v570_v58, %v569_v57  ;;  %v535_v0 = vadd.f32 %v1491_v35, %v534_v60  ;;  %v575_v10 = vmax.f32 %v543_v2, 0.0  ;;  %1779 = vmatpush3.bf16.msra.mxu0 %v1933_v34 }
 0x216   :  { %v1707_v63 = vpop.f32.mrf.mxu1  ;;  %1780 = vmatprep.subr.bf16.mxu0 %v1934_v36 }
 0x217   :  { %v546_v1 = vadd.f32 %v1707_v63, %v1491_v35  ;;  %1732 = vmatprep.mubr.bf16.mxu0 %v583_v61  ;;  %v573_v8 = vmax.f32 %v535_v0, 0.0  ;;  %v1937_v61 = vld [vmem:[#allocation10 + $0x10] sm:$0xff]   ;;  %v1939_v63 = vld [vmem:[#allocation10] sm:$0xff]  }
 0x218   :  { %v537_v3 = vpop.f32.mrf.mxu1  ;;  %1733 = vmatmul.mubr.bf16.gmra.mxu0 %v584_v62  ;;  %v1938_v62 = vld [vmem:[#allocation10 + $0x8] sm:$0xff]   ;;  %v1508_v0 = vld [vmem:[%s2315_s6] ss:$0 sm:$0xff] }
 0x219   :  { %v538_v5 = vadd.f32 %v1491_v35, %v537_v3  ;;  %v576_v6 = vmax.f32 %v546_v1, 0.0  ;;  %1781 = vmatpush3.bf16.msra.mxu0 %v1934_v36 }
 0x21a   :  { %v1710_v7 = vpop.f32.mrf.mxu1  ;;  %1782 = vmatprep.subr.bf16.mxu0 %v1935_v37 }
 0x21b   :  { %v574_v9 = vmax.f32 %v538_v5, 0.0  ;;  %v586_v13 = vpack.c.bf16 %v576_v6, %v575_v10  ;;  %v559_v24 = vadd.f32 %v1710_v7, %v1491_v35 }
 0x21c   :  { %v550_v11 = vpop.f32.mrf.mxu1 }
 0x21d   :  { %v585_v12 = vpack.c.bf16 %v574_v9, %v573_v8  ;;  %v551_v22 = vadd.f32 %v1491_v35, %v550_v11  ;;  %v579_v30 = vmax.f32 %v559_v24, 0.0  ;;  %1783 = vmatpush3.bf16.msra.mxu0 %v1935_v37 }
 0x21e   :  { %v1711_v21 = vpop.f32.mrf.mxu1 }
 0x21f   :  { %v562_v23 = vadd.f32 %v1711_v21, %v1491_v35  ;;  %1736 = vmatprep.mubr.bf16.mxu0 %v585_v12  ;;  %v577_v28 = vmax.f32 %v551_v22, 0.0 }
 0x220   :  { %v553_v25 = vpop.f32.mrf.mxu1  ;;  %1737 = vmatmul.mubr.bf16.gmra.mxu0 %v586_v13 }
 0x221   :  { %v554_v26 = vadd.f32 %v1491_v35, %v553_v25  ;;  %v580_v27 = vmax.f32 %v562_v23, 0.0  ;;  %v1936_v35 = vld [vmem:[#allocation10 + $0x18] sm:$0xff]  }
 0x222   :  { %1784 = vmatprep.subr.bf16.mxu0 %v1936_v35 }
 0x223   :  { %v578_v29 = vmax.f32 %v554_v26, 0.0  ;;  %v588_v33 = vpack.c.bf16 %v580_v27, %v579_v30  ;;  %1785 = vmatpush3.bf16.msra.mxu0 %v1936_v35 }
 0x224   :  { %1786 = vmatprep.subr.bf16.mxu0 %v1937_v61 }
 0x225   :  { %v587_v32 = vpack.c.bf16 %v578_v29, %v577_v28 }
 0x227   :  { %1740 = vmatprep.mubr.bf16.mxu0 %v587_v32  ;;  %1787 = vmatpush3.bf16.msra.mxu0 %v1937_v61 }
 0x228   :  { %1741 = vmatmul.mubr.bf16.gmra.mxu0 %v588_v33  ;;  %1788 = vmatprep.subr.bf16.mxu0 %v1938_v62 }
 0x22b   :  { %1789 = vmatpush3.bf16.msra.mxu0 %v1938_v62  ;;  %v1945_v62 = vld [vmem:[#allocation11 + $0x10] sm:$0xff]  }
 0x22c   :  { %1790 = vmatprep.subr.bf16.mxu0 %v1939_v63 }
 0x22f   :  { %1791 = vmatpush3.bf16.msra.mxu0 %v1939_v63  ;;  %v1946_v63 = vld [vmem:[#allocation11 + $0x8] sm:$0xff]  }
 0x2d0   :  { %v1730_v38 = vpop.f32.mrf.mxu0 }
 0x2d2   :  { %v687_v39 = vpop.f32.mrf.mxu0 }
 0x2d4   :  { %v1731_v4 = vpop.f32.mrf.mxu0 }
 0x2d5   :  { %v751_v59 = vpack.c.bf16 %v1731_v4, %v1730_v38 }
 0x2d6   :  { %v690_v40 = vpop.f32.mrf.mxu0 }
 0x2d7   :  { %v750_v60 = vpack.c.bf16 %v690_v40, %v687_v39 }
 0x2d8   :  { %v1734_v41 = vpop.f32.mrf.mxu0 }
 0x2da   :  { %v703_v42 = vpop.f32.mrf.mxu0 }
 0x2dc   :  { %v1735_v43 = vpop.f32.mrf.mxu0 }
 0x2dd   :  { %v753_v57 = vpack.c.bf16 %v1735_v43, %v1734_v41 }
 0x2de   :  { %v706_v44 = vpop.f32.mrf.mxu0 }
 0x2df   :  { %v752_v58 = vpack.c.bf16 %v706_v44, %v703_v42 }
 0x2e0   :  { %v1738_v45 = vpop.f32.mrf.mxu0 }
 0x2e2   :  { %v719_v46 = vpop.f32.mrf.mxu0 }
 0x2e4   :  { %v1739_v47 = vpop.f32.mrf.mxu0 }
 0x2e5   :  { %v755_v55 = vpack.c.bf16 %v1739_v47, %v1738_v45 }
 0x2e6   :  { %v722_v48 = vpop.f32.mrf.mxu0 }
 0x2e7   :  { %v754_v56 = vpack.c.bf16 %v722_v48, %v719_v46 }
 0x2e8   :  { %v1742_v49 = vpop.f32.mrf.mxu0 }
 0x2ea   :  { %v735_v50 = vpop.f32.mrf.mxu0 }
 0x2ec   :  { %v1743_v51 = vpop.f32.mrf.mxu0 }
 0x2ed   :  { %v757_v52 = vpack.c.bf16 %v1743_v51, %v1742_v49 }
 0x2ee   :  { %v738_v53 = vpop.f32.mrf.mxu0 }
 0x2ef   :  { %v756_v54 = vpack.c.bf16 %v738_v53, %v735_v50  ;;  %1744 = vmatprep.subr.bf16.mxu1 %v757_v52 }
 0x2f0   :  { %1745 = vmatpush3.bf16.msra.mxu1 %v757_v52 }
 0x2f1   :  { %1746 = vmatprep.subr.bf16.mxu1 %v756_v54 }
 0x2f4   :  { %1747 = vmatpush3.bf16.msra.mxu1 %v756_v54 }
 0x2f5   :  { %1748 = vmatprep.subr.bf16.mxu1 %v755_v55 }
 0x2f8   :  { %1749 = vmatpush3.bf16.msra.mxu1 %v755_v55 }
 0x2f9   :  { %1750 = vmatprep.subr.bf16.mxu1 %v754_v56 }
 0x2fc   :  { %1751 = vmatpush3.bf16.msra.mxu1 %v754_v56 }
 0x2fd   :  { %1752 = vmatprep.subr.bf16.mxu1 %v753_v57 }
 0x300   :  { %1753 = vmatpush3.bf16.msra.mxu1 %v753_v57 }
 0x301   :  { %1754 = vmatprep.subr.bf16.mxu1 %v752_v58 }
 0x304   :  { %1755 = vmatpush3.bf16.msra.mxu1 %v752_v58 }
 0x305   :  { %1756 = vmatprep.subr.bf16.mxu1 %v751_v59 }
 0x308   :  { %1757 = vmatpush3.bf16.msra.mxu1 %v751_v59 }
 0x309   :  { %1758 = vmatprep.subr.bf16.mxu1 %v750_v60 }
 0x30c   :  { %1759 = vmatpush3.bf16.msra.mxu1 %v750_v60 }
 0x30f   :  { %1761 = vmatmul.mubr.bf16.vlgmr.msra.gmra.mxu1 %v2253_v14  ;;  %v1940_v14 = vld [vmem:[#allocation11 + $0x38] sm:$0xff]  }
 0x310   :  { %1764 = vmatprep.mubr.bf16.mxu1 %v2255_v15  ;;  %v1941_v15 = vld [vmem:[#allocation11 + $0x30] sm:$0xff]   ;;  %1808 = vmatprep.subr.bf16.mxu1 %v1940_v14 }
 0x311   :  { %1809 = vmatpush3.bf16.msra.mxu1 %v1940_v14  ;;  %v1947_v14 = vld [vmem:[#allocation11] sm:$0xff]  }
 0x312   :  { %1810 = vmatprep.subr.bf16.mxu1 %v1941_v15 }
 0x315   :  { %1811 = vmatpush3.bf16.msra.mxu1 %v1941_v15  ;;  %v1948_v15 = vld [vmem:[#allocation13 + $0x38] sm:$0xff]  }
 0x316   :  { %1840 = vmatprep.subr.bf16.mxu0 %v1948_v15 }
 0x317   :  { %1765 = vmatmul.mubr.bf16.gmra.mxu1 %v2259_v16  ;;  %v1942_v16 = vld [vmem:[#allocation11 + $0x28] sm:$0xff]  }
 0x318   :  { %1768 = vmatprep.mubr.bf16.mxu1 %v2261_v17  ;;  %1812 = vmatprep.subr.bf16.mxu1 %v1942_v16  ;;  %v1943_v17 = vld [vmem:[#allocation11 + $0x20] sm:$0xff]  }
 0x319   :  { %1813 = vmatpush3.bf16.msra.mxu1 %v1942_v16  ;;  %v1949_v16 = vld [vmem:[#allocation13 + $0x30] sm:$0xff]  }
 0x31a   :  { %1814 = vmatprep.subr.bf16.mxu1 %v1943_v17 }
 0x31d   :  { %1815 = vmatpush3.bf16.msra.mxu1 %v1943_v17  ;;  %v1950_v17 = vld [vmem:[#allocation13 + $0x28] sm:$0xff]  }
 0x31f   :  { %1769 = vmatmul.mubr.bf16.gmra.mxu1 %v2265_v18  ;;  %v1944_v18 = vld [vmem:[#allocation11 + $0x18] sm:$0xff]  }
 0x320   :  { %1772 = vmatprep.mubr.bf16.mxu1 %v2267_v19  ;;  %1816 = vmatprep.subr.bf16.mxu1 %v1944_v18 }
 0x321   :  { %1817 = vmatpush3.bf16.msra.mxu1 %v1944_v18  ;;  %v1951_v18 = vld [vmem:[#allocation13 + $0x20] sm:$0xff]  }
 0x322   :  { %1818 = vmatprep.subr.bf16.mxu1 %v1945_v62 }
 0x325   :  { %1819 = vmatpush3.bf16.msra.mxu1 %v1945_v62 }
 0x326   :  { %1820 = vmatprep.subr.bf16.mxu1 %v1946_v63 }
 0x327   :  { %1773 = vmatmul.mubr.bf16.gmra.mxu1 %v2271_v20 }
 0x329   :  { %1821 = vmatpush3.bf16.msra.mxu1 %v1946_v63  ;;  %v1953_v63 = vld [vmem:[#allocation13 + $0x10] sm:$0xff]  }
 0x32a   :  { %1822 = vmatprep.subr.bf16.mxu1 %v1947_v14 }
 0x32d   :  { %1823 = vmatpush3.bf16.msra.mxu1 %v1947_v14  ;;  %v1954_v14 = vld [vmem:[#allocation13 + $0x8] sm:$0xff]  }
 0x32e   :  { %1872 = vmatprep.subr.bf16.mxu1 %v1948_v15 }
 0x3cf   :  { %v1762_v19 = vpop.f32.mrf.mxu1 }
 0x3d0   :  { %v808_v5 = vadd.f32 %v1762_v19, %v1508_v0  ;;  %v2291_v19 = vld [vmem:[#allocation13 + $0x18] sm:$0xff]  }
 0x3d1   :  { %v799_v20 = vpop.f32.mrf.mxu1 }
 0x3d2   :  { %v800_v2 = vadd.f32 %v1508_v0, %v799_v20  ;;  %v864_v12 = vmax.f32 %v808_v5, 0.0 }
 0x3d3   :  { %v1763_v1 = vpop.f32.mrf.mxu1 }
 0x3d4   :  { %v811_v3 = vadd.f32 %v1763_v1, %v1508_v0  ;;  %v862_v10 = vmax.f32 %v800_v2, 0.0  ;;  %v1509_v1 = vld [vmem:[%s2317_s8] ss:$0 sm:$0xff] }
 0x3d5   :  { %v802_v6 = vpop.f32.mrf.mxu1 }
 0x3d6   :  { %v803_v7 = vadd.f32 %v1508_v0, %v802_v6  ;;  %v865_v8 = vmax.f32 %v811_v3, 0.0 }
 0x3d7   :  { %v1766_v9 = vpop.f32.mrf.mxu1 }
 0x3d8   :  { %v863_v11 = vmax.f32 %v803_v7, 0.0  ;;  %v879_v22 = vpack.c.bf16 %v865_v8, %v864_v12  ;;  %v824_v26 = vadd.f32 %v1766_v9, %v1508_v0 }
 0x3d9   :  { %v815_v13 = vpop.f32.mrf.mxu1 }
 0x3da   :  { %v878_v21 = vpack.c.bf16 %v863_v11, %v862_v10  ;;  %v816_v24 = vadd.f32 %v1508_v0, %v815_v13  ;;  %v868_v31 = vmax.f32 %v824_v26, 0.0 }
 0x3db   :  { %v1767_v23 = vpop.f32.mrf.mxu1 }
 0x3dc   :  { %v827_v25 = vadd.f32 %v1767_v23, %v1508_v0  ;;  %1792 = vmatprep.mubr.bf16.mxu0 %v878_v21  ;;  %v866_v32 = vmax.f32 %v816_v24, 0.0 }
 0x3dd   :  { %v818_v27 = vpop.f32.mrf.mxu1  ;;  %1793 = vmatmul.mubr.bf16.vlgmr.msra.gmra.mxu0 %v879_v22 }
 0x3de   :  { %v819_v28 = vadd.f32 %v1508_v0, %v818_v27  ;;  %v869_v29 = vmax.f32 %v827_v25, 0.0  ;;  %1841 = vmatpush3.bf16.msra.mxu0 %v1948_v15 }
 0x3df   :  { %v1770_v30 = vpop.f32.mrf.mxu1  ;;  %1842 = vmatprep.subr.bf16.mxu0 %v1949_v16 }
 0x3e0   :  { %v867_v33 = vmax.f32 %v819_v28, 0.0  ;;  %v881_v37 = vpack.c.bf16 %v869_v29, %v868_v31  ;;  %v840_v4 = vadd.f32 %v1770_v30, %v1508_v0 }
 0x3e1   :  { %v831_v34 = vpop.f32.mrf.mxu1 }
 0x3e2   :  { %v880_v36 = vpack.c.bf16 %v867_v33, %v866_v32  ;;  %v832_v38 = vadd.f32 %v1508_v0, %v831_v34  ;;  %v872_v46 = vmax.f32 %v840_v4, 0.0  ;;  %1843 = vmatpush3.bf16.msra.mxu0 %v1949_v16 }
 0x3e3   :  { %v1771_v35 = vpop.f32.mrf.mxu1  ;;  %1844 = vmatprep.subr.bf16.mxu0 %v1950_v17 }
 0x3e4   :  { %v843_v39 = vadd.f32 %v1771_v35, %v1508_v0  ;;  %1796 = vmatprep.mubr.bf16.mxu0 %v880_v36  ;;  %v870_v44 = vmax.f32 %v832_v38, 0.0 }
 0x3e5   :  { %v834_v40 = vpop.f32.mrf.mxu1  ;;  %1797 = vmatmul.mubr.bf16.gmra.mxu0 %v881_v37 }
 0x3e6   :  { %v835_v41 = vadd.f32 %v1508_v0, %v834_v40  ;;  %v873_v42 = vmax.f32 %v843_v39, 0.0  ;;  %1845 = vmatpush3.bf16.msra.mxu0 %v1950_v17 }
 0x3e7   :  { %v1774_v43 = vpop.f32.mrf.mxu1  ;;  %1846 = vmatprep.subr.bf16.mxu0 %v1951_v18 }
 0x3e8   :  { %v871_v45 = vmax.f32 %v835_v41, 0.0  ;;  %v883_v49 = vpack.c.bf16 %v873_v42, %v872_v46  ;;  %v856_v53 = vadd.f32 %v1774_v43, %v1508_v0 }
 0x3e9   :  { %v847_v47 = vpop.f32.mrf.mxu1 }
 0x3ea   :  { %v882_v48 = vpack.c.bf16 %v871_v45, %v870_v44  ;;  %v848_v51 = vadd.f32 %v1508_v0, %v847_v47  ;;  %v876_v59 = vmax.f32 %v856_v53, 0.0  ;;  %1847 = vmatpush3.bf16.msra.mxu0 %v1951_v18 }
 0x3eb   :  { %v1775_v50 = vpop.f32.mrf.mxu1  ;;  %1848 = vmatprep.subr.bf16.mxu0 %v2291_v19 }
 0x3ec   :  { %v859_v52 = vadd.f32 %v1775_v50, %v1508_v0  ;;  %1800 = vmatprep.mubr.bf16.mxu0 %v882_v48  ;;  %v874_v57 = vmax.f32 %v848_v51, 0.0 }
 0x3ed   :  { %v850_v54 = vpop.f32.mrf.mxu1  ;;  %1801 = vmatmul.mubr.bf16.gmra.mxu0 %v883_v49 }
 0x3ee   :  { %v851_v55 = vadd.f32 %v1508_v0, %v850_v54  ;;  %v877_v56 = vmax.f32 %v859_v52, 0.0  ;;  %1849 = vmatpush3.bf16.msra.mxu0 %v2291_v19 }
 0x3ef   :  { %1850 = vmatprep.subr.bf16.mxu0 %v1953_v63 }
 0x3f0   :  { %v875_v58 = vmax.f32 %v851_v55, 0.0  ;;  %v885_v61 = vpack.c.bf16 %v877_v56, %v876_v59 }
 0x3f2   :  { %v884_v60 = vpack.c.bf16 %v875_v58, %v874_v57  ;;  %1851 = vmatpush3.bf16.msra.mxu0 %v1953_v63 }
 0x3f3   :  { %1852 = vmatprep.subr.bf16.mxu0 %v1954_v14 }
 0x3f4   :  { %1804 = vmatprep.mubr.bf16.mxu0 %v884_v60 }
 0x3f5   :  { %1805 = vmatmul.mubr.bf16.gmra.mxu0 %v885_v61 }
 0x3f6   :  { %1853 = vmatpush3.bf16.msra.mxu0 %v1954_v14 }
 0x49d   :  { %v1794_v20 = vpop.f32.mrf.mxu0 }
 0x49e   :  { %v1000_v6 = vadd.f32 %v1794_v20, %v1509_v1 }
 0x49f   :  { %v991_v0 = vpop.f32.mrf.mxu0 }
 0x4a0   :  { %v992_v3 = vadd.f32 %v1509_v1, %v991_v0  ;;  %v1056_v13 = vmax.f32 %v1000_v6, 0.0 }
 0x4a1   :  { %v1795_v2 = vpop.f32.mrf.mxu0 }
 0x4a2   :  { %v1003_v5 = vadd.f32 %v1795_v2, %v1509_v1  ;;  %v1054_v11 = vmax.f32 %v992_v3, 0.0 }
 0x4a3   :  { %v994_v7 = vpop.f32.mrf.mxu0 }
 0x4a4   :  { %v995_v8 = vadd.f32 %v1509_v1, %v994_v7  ;;  %v1057_v9 = vmax.f32 %v1003_v5, 0.0 }
 0x4a5   :  { %v1798_v10 = vpop.f32.mrf.mxu0 }
 0x4a6   :  { %v1055_v12 = vmax.f32 %v995_v8, 0.0  ;;  %v1071_v23 = vpack.c.bf16 %v1057_v9, %v1056_v13  ;;  %v1016_v27 = vadd.f32 %v1798_v10, %v1509_v1 }
 0x4a7   :  { %v1007_v21 = vpop.f32.mrf.mxu0 }
 0x4a8   :  { %v1070_v22 = vpack.c.bf16 %v1055_v12, %v1054_v11  ;;  %v1008_v25 = vadd.f32 %v1509_v1, %v1007_v21  ;;  %v1060_v34 = vmax.f32 %v1016_v27, 0.0 }
 0x4a9   :  { %v1799_v24 = vpop.f32.mrf.mxu0 }
 0x4aa   :  { %v1019_v26 = vadd.f32 %v1799_v24, %v1509_v1  ;;  %1824 = vmatprep.mubr.bf16.mxu1 %v1070_v22  ;;  %v1058_v33 = vmax.f32 %v1008_v25, 0.0 }
 0x4ab   :  { %v1010_v28 = vpop.f32.mrf.mxu0  ;;  %1825 = vmatmul.mubr.bf16.vlgmr.msra.gmra.mxu1 %v1071_v23 }
 0x4ac   :  { %v1011_v29 = vadd.f32 %v1509_v1, %v1010_v28  ;;  %1880 = vmatpush3.bf16.msra.mxu1 %v1948_v15  ;;  %v1061_v30 = vmax.f32 %v1019_v26, 0.0  ;;  %v1955_v15 = vld [vmem:[#allocation13] sm:$0xff]  }
 0x4ad   :  { %v1802_v32 = vpop.f32.mrf.mxu0  ;;  %1873 = vmatprep.subr.bf16.mxu1 %v1949_v16  ;;  %1854 = vmatprep.subr.bf16.mxu0 %v1955_v15 }
 0x4ae   :  { %v1059_v31 = vmax.f32 %v1011_v29, 0.0  ;;  %v1073_v35 = vpack.c.bf16 %v1061_v30, %v1060_v34  ;;  %v1032_v40 = vadd.f32 %v1802_v32, %v1509_v1  ;;  %1855 = vmatpush3.bf16.msra.mxu0 %v1955_v15 }
 0x4af   :  { %v1023_v36 = vpop.f32.mrf.mxu0 }
 0x4b0   :  { %v1072_v37 = vpack.c.bf16 %v1059_v31, %v1058_v33  ;;  %1881 = vmatpush3.bf16.msra.mxu1 %v1949_v16  ;;  %v1024_v39 = vadd.f32 %v1509_v1, %v1023_v36  ;;  %v1064_v47 = vmax.f32 %v1032_v40, 0.0 }
 0x4b1   :  { %v1803_v38 = vpop.f32.mrf.mxu0  ;;  %1874 = vmatprep.subr.bf16.mxu1 %v1950_v17 }
 0x4b2   :  { %v1035_v4 = vadd.f32 %v1803_v38, %v1509_v1  ;;  %1828 = vmatprep.mubr.bf16.mxu1 %v1072_v37  ;;  %v1062_v45 = vmax.f32 %v1024_v39, 0.0 }
 0x4b3   :  { %v1026_v41 = vpop.f32.mrf.mxu0  ;;  %1829 = vmatmul.mubr.bf16.gmra.mxu1 %v1073_v35 }
 0x4b4   :  { %v1027_v42 = vadd.f32 %v1509_v1, %v1026_v41  ;;  %1882 = vmatpush3.bf16.msra.mxu1 %v1950_v17  ;;  %v1065_v43 = vmax.f32 %v1035_v4, 0.0 }
 0x4b5   :  { %v1806_v44 = vpop.f32.mrf.mxu0  ;;  %1875 = vmatprep.subr.bf16.mxu1 %v1951_v18 }
 0x4b6   :  { %v1063_v46 = vmax.f32 %v1027_v42, 0.0  ;;  %v1075_v50 = vpack.c.bf16 %v1065_v43, %v1064_v47  ;;  %v1048_v54 = vadd.f32 %v1806_v44, %v1509_v1 }
 0x4b7   :  { %v1039_v48 = vpop.f32.mrf.mxu0 }
 0x4b8   :  { %v1074_v49 = vpack.c.bf16 %v1063_v46, %v1062_v45  ;;  %1883 = vmatpush3.bf16.msra.mxu1 %v1951_v18  ;;  %v1040_v52 = vadd.f32 %v1509_v1, %v1039_v48  ;;  %v1068_v60 = vmax.f32 %v1048_v54, 0.0  ;;  %v1518_v18 = vld [vmem:[%s2319_s10] ss:$0 sm:$0xff] }
 0x4b9   :  { %v1807_v51 = vpop.f32.mrf.mxu0  ;;  %1876 = vmatprep.subr.bf16.mxu1 %v2291_v19 }
 0x4ba   :  { %v1051_v53 = vadd.f32 %v1807_v51, %v1509_v1  ;;  %1832 = vmatprep.mubr.bf16.mxu1 %v1074_v49  ;;  %v1066_v58 = vmax.f32 %v1040_v52, 0.0 }
 0x4bb   :  { %v1042_v55 = vpop.f32.mrf.mxu0  ;;  %1833 = vmatmul.mubr.bf16.gmra.mxu1 %v1075_v50 }
 0x4bc   :  { %v1043_v56 = vadd.f32 %v1509_v1, %v1042_v55  ;;  %1884 = vmatpush3.bf16.msra.mxu1 %v2291_v19  ;;  %v1069_v57 = vmax.f32 %v1051_v53, 0.0 }
 0x4bd   :  { %1877 = vmatprep.subr.bf16.mxu1 %v1953_v63 }
 0x4be   :  { %v1067_v59 = vmax.f32 %v1043_v56, 0.0  ;;  %v1077_v62 = vpack.c.bf16 %v1069_v57, %v1068_v60 }
 0x4c0   :  { %v1076_v61 = vpack.c.bf16 %v1067_v59, %v1066_v58  ;;  %1885 = vmatpush3.bf16.msra.mxu1 %v1953_v63  ;;  %v1527_v59 = vld [vmem:[%s2321_s12] ss:$0 sm:$0xff]  ;;  %s2135_s12 = smov [#allocation14]  }
 0x4c1   :  { %1878 = vmatprep.subr.bf16.mxu1 %v1954_v14  ;;  %s1459_s26 = sshll.u32 %s2135_s12, 4  ;;  %s1460_s26 = int_to_ptr.vmem [resolvable:$true] %s1459_s26 }
 0x4c2   :  { %1836 = vmatprep.mubr.bf16.mxu1 %v1076_v61  ;;  %s2096_s27 = scalar_lea.vmem %s1460_s26, 2048  ;;  %p2101_p8 = scmp.lt.s32.totalorder %s1460_s26, %s1460_s26 }
 0x4c3   :  { %1837 = vmatmul.mubr.bf16.gmra.mxu1 %v1077_v62  ;;  %p2097_p7 = scmp.ne.s32.totalorder %s1460_s26, %s2096_s27  ;;  %p2102_p9 = scmp.lt.s32.totalorder %s2096_s27, %s2096_s27 }
 0x4c4   :  { %1886 = vmatpush3.bf16.msra.mxu1 %v1954_v14 }
 0x4c5   :  { %1879 = vmatprep.subr.bf16.mxu1 %v1955_v15  ;;  %p2103_p10 = por %p2102_p9, %p2101_p8 }
 0x4c7   :  { %p2104_p11 = pnand %p2103_p10, %p2097_p7 }
 0x4c8   :  { %1887 = vmatpush3.bf16.msra.mxu1 %v1955_v15 }
 0x56b   :  { %v1826_v16 = vpop.f32.mrf.mxu1 }
 0x56c   :  { %v1192_v1 = vadd.f32 %v1826_v16, %v1518_v18 }
 0x56d   :  { %v1183_v17 = vpop.f32.mrf.mxu1 }
 0x56e   :  { %v1184_v20 = vadd.f32 %v1518_v18, %v1183_v17  ;;  %v1248_v9 = vmax.f32 %v1192_v1, 0.0 }
 0x56f   :  { %v1827_v19 = vpop.f32.mrf.mxu1 }
 0x570   :  { %v1195_v0 = vadd.f32 %v1827_v19, %v1518_v18  ;;  %v1246_v7 = vmax.f32 %v1184_v20, 0.0 }
 0x571   :  { %v1186_v2 = vpop.f32.mrf.mxu1 }
 0x572   :  { %v1187_v3 = vadd.f32 %v1518_v18, %v1186_v2  ;;  %v1249_v5 = vmax.f32 %v1195_v0, 0.0 }
 0x573   :  { %v1830_v6 = vpop.f32.mrf.mxu1 }
 0x574   :  { %v1247_v8 = vmax.f32 %v1187_v3, 0.0  ;;  %v1263_v12 = vpack.c.bf16 %v1249_v5, %v1248_v9  ;;  %v1208_v23 = vadd.f32 %v1830_v6, %v1518_v18 }
 0x575   :  { %v1199_v10 = vpop.f32.mrf.mxu1 }
 0x576   :  { %v1262_v11 = vpack.c.bf16 %v1247_v8, %v1246_v7  ;;  %v1200_v21 = vadd.f32 %v1518_v18, %v1199_v10  ;;  %v1252_v30 = vmax.f32 %v1208_v23, 0.0 }
 0x577   :  { %v1831_v13 = vpop.f32.mrf.mxu1 }
 0x578   :  { %v1211_v22 = vadd.f32 %v1831_v13, %v1518_v18  ;;  %1856 = vmatprep.mubr.bf16.mxu0 %v1262_v11  ;;  %v1250_v28 = vmax.f32 %v1200_v21, 0.0 }
 0x579   :  { %v1202_v24 = vpop.f32.mrf.mxu1  ;;  %1857 = vmatmul.mubr.bf16.vlgmr.msra.gmra.mxu0 %v1263_v12 }
 0x57a   :  { %v1203_v25 = vadd.f32 %v1518_v18, %v1202_v24  ;;  %v1253_v26 = vmax.f32 %v1211_v22, 0.0 }
 0x57b   :  { %v1834_v27 = vpop.f32.mrf.mxu1 }
 0x57c   :  { %v1251_v29 = vmax.f32 %v1203_v25, 0.0  ;;  %v1265_v31 = vpack.c.bf16 %v1253_v26, %v1252_v30  ;;  %v1224_v35 = vadd.f32 %v1834_v27, %v1518_v18 }
 0x57d   :  { %v1215_v32 = vpop.f32.mrf.mxu1 }
 0x57e   :  { %v1264_v33 = vpack.c.bf16 %v1251_v29, %v1250_v28  ;;  %v1216_v36 = vadd.f32 %v1518_v18, %v1215_v32  ;;  %v1256_v43 = vmax.f32 %v1224_v35, 0.0 }
 0x57f   :  { %v1835_v34 = vpop.f32.mrf.mxu1 }
 0x580   :  { %v1227_v37 = vadd.f32 %v1835_v34, %v1518_v18  ;;  %1860 = vmatprep.mubr.bf16.mxu0 %v1264_v33  ;;  %v1254_v41 = vmax.f32 %v1216_v36, 0.0 }
 0x581   :  { %v1218_v38 = vpop.f32.mrf.mxu1  ;;  %1861 = vmatmul.mubr.bf16.gmra.mxu0 %v1265_v31 }
 0x582   :  { %v1219_v39 = vadd.f32 %v1518_v18, %v1218_v38  ;;  %v1257_v4 = vmax.f32 %v1227_v37, 0.0 }
 0x583   :  { %v1838_v40 = vpop.f32.mrf.mxu1 }
 0x584   :  { %v1255_v42 = vmax.f32 %v1219_v39, 0.0  ;;  %v1267_v46 = vpack.c.bf16 %v1257_v4, %v1256_v43  ;;  %v1240_v50 = vadd.f32 %v1838_v40, %v1518_v18 }
 0x585   :  { %v1231_v44 = vpop.f32.mrf.mxu1 }
 0x586   :  { %v1266_v45 = vpack.c.bf16 %v1255_v42, %v1254_v41  ;;  %v1232_v48 = vadd.f32 %v1518_v18, %v1231_v44  ;;  %v1260_v56 = vmax.f32 %v1240_v50, 0.0 }
 0x587   :  { %v1839_v47 = vpop.f32.mrf.mxu1 }
 0x588   :  { %v1243_v49 = vadd.f32 %v1839_v47, %v1518_v18  ;;  %1864 = vmatprep.mubr.bf16.mxu1 %v1266_v45  ;;  %v1258_v54 = vmax.f32 %v1232_v48, 0.0 }
 0x589   :  { %v1234_v51 = vpop.f32.mrf.mxu1  ;;  %1865 = vmatmul.mubr.bf16.vlgmr.msra.gmra.mxu1 %v1267_v46 }
 0x58a   :  { %v1235_v52 = vadd.f32 %v1518_v18, %v1234_v51  ;;  %v1261_v53 = vmax.f32 %v1243_v49, 0.0 }
 0x58c   :  { %v1259_v55 = vmax.f32 %v1235_v52, 0.0  ;;  %v1269_v58 = vpack.c.bf16 %v1261_v53, %v1260_v56 }
 0x58e   :  { %v1268_v57 = vpack.c.bf16 %v1259_v55, %v1258_v54 }
 0x590   :  { %1868 = vmatprep.mubr.bf16.mxu1 %v1268_v57 }
 0x591   :  { %1869 = vmatmul.mubr.bf16.gmra.mxu1 %v1269_v58 }
 0x639   :  { %v1858_v60 = vpop.f32.mrf.mxu0 }
 0x63a   :  { %v1384_v61 = vadd.f32 %v1858_v60, %v1527_v59 }
 0x63b   :  { %v1375_v62 = vpop.f32.mrf.mxu0 }
 0x63c   :  { %1440 = vst [vmem:[#allocation14 + $0x10] sm:$0xff] %v1384_v61  ;;  %v1376_v63 = vadd.f32 %v1527_v59, %v1375_v62 }
 0x63d   :  { %v1859_v14 = vpop.f32.mrf.mxu0 }
 0x63e   :  { %1438 = vst [vmem:[#allocation14] sm:$0xff] %v1376_v63  ;;  %v1387_v15 = vadd.f32 %v1859_v14, %v1527_v59 }
 0x63f   :  { %v1378_v16 = vpop.f32.mrf.mxu0 }
 0x640   :  { %1441 = vst [vmem:[#allocation14 + $0x18] sm:$0xff] %v1387_v15  ;;  %v1379_v17 = vadd.f32 %v1527_v59, %v1378_v16 }
 0x641   :  { %v1862_v18 = vpop.f32.mrf.mxu0 }
 0x642   :  { %1439 = vst [vmem:[#allocation14 + $0x8] sm:$0xff] %v1379_v17  ;;  %v1400_v19 = vadd.f32 %v1862_v18, %v1527_v59 }
 0x643   :  { %v1391_v20 = vpop.f32.mrf.mxu0 }
 0x644   :  { %1444 = vst [vmem:[#allocation14 + $0x30] sm:$0xff] %v1400_v19  ;;  %v1392_v0 = vadd.f32 %v1527_v59, %v1391_v20 }
 0x645   :  { %v1863_v1 = vpop.f32.mrf.mxu0 }
 0x646   :  { %1442 = vst [vmem:[#allocation14 + $0x20] sm:$0xff] %v1392_v0  ;;  %v1403_v2 = vadd.f32 %v1863_v1, %v1527_v59 }
 0x647   :  { %v1394_v3 = vpop.f32.mrf.mxu0 }
 0x648   :  { %1445 = vst [vmem:[#allocation14 + $0x38] sm:$0xff] %v1403_v2  ;;  %v1395_v5 = vadd.f32 %v1527_v59, %v1394_v3 }
 0x649   :  { %v1866_v6 = vpop.f32.mrf.mxu1 }
 0x64a   :  { %1443 = vst [vmem:[#allocation14 + $0x28] sm:$0xff] %v1395_v5  ;;  %v1416_v7 = vadd.f32 %v1866_v6, %v1527_v59 }
 0x64b   :  { %v1407_v8 = vpop.f32.mrf.mxu1 }
 0x64c   :  { %1448 = vst [vmem:[#allocation14 + $0x50] sm:$0xff] %v1416_v7  ;;  %v1408_v9 = vadd.f32 %v1527_v59, %v1407_v8 }
 0x64d   :  { %v1867_v10 = vpop.f32.mrf.mxu1 }
 0x64e   :  { %1446 = vst [vmem:[#allocation14 + $0x40] sm:$0xff] %v1408_v9  ;;  %v1419_v11 = vadd.f32 %v1867_v10, %v1527_v59 }
 0x64f   :  { %v1410_v12 = vpop.f32.mrf.mxu1 }
 0x650   :  { %1449 = vst [vmem:[#allocation14 + $0x58] sm:$0xff] %v1419_v11  ;;  %v1411_v13 = vadd.f32 %v1527_v59, %v1410_v12 }
 0x651   :  { %v1870_v21 = vpop.f32.mrf.mxu1 }
 0x652   :  { %1447 = vst [vmem:[#allocation14 + $0x48] sm:$0xff] %v1411_v13  ;;  %v1432_v22 = vadd.f32 %v1870_v21, %v1527_v59 }
 0x653   :  { %v1423_v23 = vpop.f32.mrf.mxu1 }
 0x654   :  { %1452 = vst [vmem:[#allocation14 + $0x70] sm:$0xff] %v1432_v22  ;;  %v1424_v24 = vadd.f32 %v1527_v59, %v1423_v23 }
 0x655   :  { %v1871_v25 = vpop.f32.mrf.mxu1 }
 0x656   :  { %1450 = vst [vmem:[#allocation14 + $0x60] sm:$0xff] %v1424_v24  ;;  %v1435_v26 = vadd.f32 %v1871_v25, %v1527_v59 }
 0x657   :  { %v1426_v27 = vpop.f32.mrf.mxu1 }
 0x658   :  { %1453 = vst [vmem:[#allocation14 + $0x78] sm:$0xff] %v1435_v26  ;;  %v1427_v28 = vadd.f32 %v1527_v59, %v1426_v27 }
 0x65a   :  { %1451 = vst [vmem:[#allocation14 + $0x68] sm:$0xff] %v1427_v28 }
 0x65b   :  { %2107 = shalt.err (!%p2104_p11)
}
 0x65c   :  { %s2136_s28 = smov 128   ;;  %s2137_s29 = smov 8  }
 0x65d   :  { %1465 = dma.vmem_to_hbm [thread:$0]  %s1460_s26, 2048, %s2322_s13, [#allocation4], %s2136_s28, %s2136_s28, %s2137_s29  }
 0x65e   :  { %2124 = dma.done.wait [#allocation4], 2048  }
 0x65f   :  { %2125 = vsyncadd [#allocation4], 4294965248 }
 0x660   :  { %1469 = vsyncpa [#allocation3], 1 }
 0x661   :  { %1470 = vsyncpa [#allocation6], 1 }
 0x662   :  { %1471 = vsyncpa [#allocation9], 1 }
 0x663   :  { %1472 = vsyncpa [#allocation12], 1 }
 0x664   :  { %1473 = vsyncpa [#allocation4], 1 }

</bundles_post_ra>
